<compile_context>
chip_gen: v6e
topology: v6e:2x2x1
jax: 0.10.0
libtpu: 0.0.40
codegen_flags: <defaults>
</compile_context>

<pallas_src>
import functools

import jax
import jax.numpy as jnp
from jax.experimental import pallas as pl
from jax.experimental.pallas import tpu as pltpu

LANE = 128
SUBLANE = 8
NEG = -1e9  # drives padded softmax logit lanes to exp() == 0


def _round_up(x, m):
    return ((x + m - 1) // m) * m


def _cdiv(a, b):
    return (a + b - 1) // b


def _pad2(a, rows, cols, value=0.0):
    r, c = a.shape
    if r == rows and c == cols:
        return a
    return jnp.pad(a, ((0, rows - r), (0, cols - c)), constant_values=value)


def prepare_params(params, *, k_block=1024):
    """Pad / fuse / cast encoder parameters ONCE (hoisted out of the forward path).

    Weights are stored [in, out]; biases [1, out].  Matmul weights become bf16
    (MXU-native); biases stay f32.  Returns a dict of device arrays plus the
    padded geometry.
    """
    input_size, hidden = params["w1"].shape
    topic = params["wmu"].shape[1]

    k_block = _round_up(max(k_block, LANE), LANE)
    input_128 = _round_up(input_size, LANE)
    tk = min(k_block, input_128)
    input_p = _round_up(input_size, tk)       # multiple of tk (and of 128)
    hidden_p = _round_up(hidden, LANE)
    topic_p = _round_up(topic, LANE)

    f32, bf16 = jnp.float32, jnp.bfloat16

    w1 = _pad2(params["w1"].astype(f32), input_p, hidden_p).astype(bf16)
    b1 = _pad2(params["b1"].astype(f32), 1, hidden_p)
    w2 = _pad2(params["w2"].astype(f32), hidden_p, hidden_p).astype(bf16)
    b2 = _pad2(params["b2"].astype(f32), 1, hidden_p)

    # Fused fc_mu | fc_log_sigma head (zero padding is numerically inert).
    wmu = _pad2(params["wmu"].astype(f32), hidden_p, topic_p)
    wls = _pad2(params["wls"].astype(f32), hidden_p, topic_p)
    whead = jnp.concatenate([wmu, wls], axis=1).astype(bf16)   # [hidden_p, 2*topic_p]
    bmu = _pad2(params["bmu"].astype(f32), 1, topic_p)
    bls = _pad2(params["bls"].astype(f32), 1, topic_p)
    bhead = jnp.concatenate([bmu, bls], axis=1)                # [1, 2*topic_p]

    wth = _pad2(params["wth"].astype(f32), topic_p, topic_p).astype(bf16)
    bth = _pad2(params["bth"].astype(f32), 1, topic_p, value=NEG)  # -inf-ish pad cols

    return dict(
        w1=w1, b1=b1, w2=w2, b2=b2, whead=whead, bhead=bhead, wth=wth, bth=bth,
        dims=dict(input_size=input_size, hidden=hidden, topic=topic,
                  input_p=input_p, hidden_p=hidden_p, topic_p=topic_p, tk=tk),
    )


def prodlda_encoder_kernel(
    bow_ref, w1_ref, b1_ref, w2_ref, b2_ref,
    whead_ref, bhead_ref, wth_ref, bth_ref, eps_ref,
    mu_ref, std_ref, theta_ref,
    h1_acc,
    *, topic_pad,
):
    k = pl.program_id(1)

    @pl.when(k == 0)
    def _init():
        h1_acc[...] = jnp.zeros_like(h1_acc)

    # Partial bow @ W1 for this vocabulary tile (bf16 MXU, f32 accumulation).
    x = bow_ref[...].astype(jnp.bfloat16)
    h1_acc[...] += jnp.dot(x, w1_ref[...], preferred_element_type=jnp.float32)

    @pl.when(k == pl.num_programs(1) - 1)
    def _finalize():
        h = jnp.maximum(h1_acc[...] + b1_ref[...], 0.0)
        h = jnp.dot(h.astype(jnp.bfloat16), w2_ref[...],
                    preferred_element_type=jnp.float32) + b2_ref[...]
        h = jnp.maximum(h, 0.0)

        # TODO(synk): dropout_enc is stochastic in train mode; implemented here
        # as identity (inference / eval-mode semantics).

        # Fused fc_mu | fc_log_sigma head: one [hidden_p, 2*topic_p] matmul.
        head = jnp.dot(h.astype(jnp.bfloat16), whead_ref[...],
                       preferred_element_type=jnp.float32) + bhead_ref[...]
        mu = head[:, :topic_pad]
        std = jnp.exp(head[:, topic_pad:])

        # reparameterize: z = eps * std + mu (padded lanes only feed zero rows
        # of Wth, so their values are irrelevant).
        z = eps_ref[...] * std + mu

        # encoder_theta + softmax over the topic axis; padded logit lanes carry
        # a -1e9 bias so exp() ~ 0 and normalization is unchanged.  Exact divide
        # so theta rows sum to 1 in f32 precision.
        logits = jnp.dot(z.astype(jnp.bfloat16), wth_ref[...],
                         preferred_element_type=jnp.float32) + bth_ref[...]
        m = jnp.max(logits, axis=-1, keepdims=True)
        e = jnp.exp(logits - m)
        theta = e / jnp.sum(e, axis=-1, keepdims=True)

        mu_ref[...] = mu.astype(mu_ref.dtype)
        std_ref[...] = std.astype(std_ref.dtype)
        theta_ref[...] = theta.astype(theta_ref.dtype)


def prodlda_encoder(bow, prep, eps, *, block_batch=128, vmem_limit_bytes=None):
    """Batch-tiled (and vocab-K-tiled) Pallas forward using prepared params."""
    dims = prep["dims"]
    input_size, topic = dims["input_size"], dims["topic"]
    input_p, hidden_p, topic_p, tk = (
        dims["input_p"], dims["hidden_p"], dims["topic_p"], dims["tk"])

    batch = bow.shape[0]
    assert bow.shape[1] == input_size

    # Balanced batch tiling: avoid a mostly-padded last tile on awkward batches,
    # and keep >=2 grid steps on realistic batches (v7x has 2 TensorCores).
    n_bt = max(_cdiv(batch, block_batch), 1)
    tb = _round_up(_cdiv(batch, n_bt), SUBLANE)
    batch_p = n_bt * tb
    n_kt = input_p // tk

    f32 = jnp.float32
    bow_p = _pad2(bow.astype(f32), batch_p, input_p)   # no-op when already aligned
    eps_p = _pad2(eps.astype(f32), batch_p, topic_p)

    grid = (n_bt, n_kt)

    def bow_map(i, k):
        return (i, k)

    def w1_map(i, k):
        return (k, 0)

    def row_map(i, k):
        return (i, 0)

    def const_map(i, k):
        return (0, 0)

    resident = pl.Buffered(1)   # grid-invariant operands: single VMEM buffer

    in_specs = [
        pl.BlockSpec((tb, tk), bow_map),                                    # bow (streamed)
        pl.BlockSpec((tk, hidden_p), w1_map),                               # W1 (streamed over K)
        pl.BlockSpec((1, hidden_p), const_map, pipeline_mode=resident),     # b1
        pl.BlockSpec((hidden_p, hidden_p), const_map, pipeline_mode=resident),   # W2
        pl.BlockSpec((1, hidden_p), const_map, pipeline_mode=resident),     # b2
        pl.BlockSpec((hidden_p, 2 * topic_p), const_map, pipeline_mode=resident),  # Whead
        pl.BlockSpec((1, 2 * topic_p), const_map, pipeline_mode=resident),  # bhead
        pl.BlockSpec((topic_p, topic_p), const_map, pipeline_mode=resident),  # Wth
        pl.BlockSpec((1, topic_p), const_map, pipeline_mode=resident),      # bth
        pl.BlockSpec((tb, topic_p), row_map),                               # eps (streamed)
    ]
    out_specs = (
        pl.BlockSpec((tb, topic_p), row_map),
        pl.BlockSpec((tb, topic_p), row_map),
        pl.BlockSpec((tb, topic_p), row_map),
    )
    out_shapes = tuple(
        jax.ShapeDtypeStruct((batch_p, topic_p), jnp.float32) for _ in range(3)
    )

    # VMEM footprint estimate (bytes); only pass an explicit limit when the
    # conservative default scoped limit would be too small.
    est = (
        2 * tb * tk * 4                      # bow tile, f32, double-buffered
        + 2 * tk * hidden_p * 2              # W1 K-tile, bf16, double-buffered
        + 2 * tb * topic_p * 4               # eps, double-buffered
        + hidden_p * hidden_p * 2            # W2 (single buffer)
        + hidden_p * 2 * topic_p * 2         # Whead
        + topic_p * topic_p * 2              # Wth
        + (2 * hidden_p + 3 * topic_p) * 4   # biases
        + 3 * 2 * tb * topic_p * 4           # outputs, double-buffered
        + tb * hidden_p * 4                  # h1 accumulator scratch
    )
    if vmem_limit_bytes is None and est > (12 << 20):
        vmem_limit_bytes = min(int(est * 1.5) + (2 << 20), 112 << 20)

    kernel = functools.partial(prodlda_encoder_kernel, topic_pad=topic_p)

    mu_p, std_p, theta_p = pl.pallas_call(
        kernel,
        out_shape=out_shapes,
        grid=grid,
        in_specs=in_specs,
        out_specs=out_specs,
        scratch_shapes=[pltpu.VMEM((tb, hidden_p), jnp.float32)],
        compiler_params=pltpu.CompilerParams(
            dimension_semantics=("parallel", "arbitrary"),
            vmem_limit_bytes=vmem_limit_bytes,
        ),
    )(bow_p, prep["w1"], prep["b1"], prep["w2"], prep["b2"],
      prep["whead"], prep["bhead"], prep["wth"], prep["bth"], eps_p)

    # Strip padding (stores were lane-dense inside the kernel).
    return (
        mu_p[:batch, :topic],
        std_p[:batch, :topic],
        theta_p[:batch, :topic],
    )


def init_params(key, input_size, hidden_size, topic_dim):
    """Deterministic synthetic parameter init (shapes match the PyTorch module).

    Weights are stored [in, out]; biases as [1, out].
    """
    ks = jax.random.split(key, 10)

    def lin(kw, kb, fan_in, fan_out):
        bound = 1.0 / jnp.sqrt(fan_in)
        w = jax.random.uniform(kw, (fan_in, fan_out), jnp.float32, -bound, bound)
        b = jax.random.uniform(kb, (1, fan_out), jnp.float32, -bound, bound)
        return w, b

    w1, b1 = lin(ks[0], ks[1], input_size, hidden_size)
    w2, b2 = lin(ks[2], ks[3], hidden_size, hidden_size)
    wmu, bmu = lin(ks[4], ks[5], hidden_size, topic_dim)
    wls, bls = lin(ks[6], ks[7], hidden_size, topic_dim)
    wth, bth = lin(ks[8], ks[9], topic_dim, topic_dim)
    return dict(w1=w1, b1=b1, w2=w2, b2=b2, wmu=wmu, bmu=bmu,
                wls=wls, bls=bls, wth=wth, bth=bth)


def reference(bow, params, eps):
    """Pure-JAX f32 reference of the eval-mode forward pass."""
    h = jax.nn.relu(bow @ params["w1"] + params["b1"])
    h = jax.nn.relu(h @ params["w2"] + params["b2"])
    mu = h @ params["wmu"] + params["bmu"]
    std = jnp.exp(h @ params["wls"] + params["bls"])
    z = eps * std + mu
    theta = jax.nn.softmax(z @ params["wth"] + params["bth"], axis=-1)
    return mu, std, theta


if __name__ == "__main__":
    # Small shapes consistent with the module: bow is [batch, input_size].
    batch, input_size, hidden_size, topic_dim = 8, 256, 64, 25

    key = jax.random.PRNGKey(0)
    k_bow, k_eps, k_params = jax.random.split(key, 3)

    bow = jax.nn.relu(
        jax.random.normal(k_bow, (batch, input_size), dtype=jnp.float32)
    )  # bag-of-words style non-negative values
    eps = jax.random.normal(k_eps, (batch, topic_dim), dtype=jnp.float32)
    params = init_params(k_params, input_size, hidden_size, topic_dim)

    prep = prepare_params(params)          # padding / fusion / bf16 cast: once
    mu, std, theta = prodlda_encoder(bow, prep, eps)
    jax.block_until_ready((mu, std, theta))

    assert mu.shape == (batch, topic_dim)
    assert std.shape == (batch, topic_dim)
    assert theta.shape == (batch, topic_dim)

    # theta rows must sum to 1 (softmax over dim=1, exact divide).
    assert jnp.allclose(jnp.sum(theta, axis=1), 1.0, atol=1e-3)

    # Match the pure-JAX f32 reference (bf16 MXU path -> loose tolerances).
    mu_r, std_r, theta_r = reference(bow, params, eps)
    assert jnp.allclose(mu, mu_r, rtol=5e-2, atol=5e-2)
    assert jnp.allclose(std, std_r, rtol=5e-2, atol=5e-2)
    assert jnp.allclose(theta, theta_r, rtol=5e-2, atol=2e-2)

    print("KERNEL_OK")
</pallas_src>

<mosaic_0001>
module attributes {stable_mosaic.version = 11 : i64} {
  func.func @prodlda_encoder_kernel(%arg0: i32, %arg1: i32, %arg2: memref<8x256xf32, #tpu.memory_space<vmem>>, %arg3: memref<256x128xbf16, #tpu.memory_space<vmem>>, %arg4: memref<1x128xf32, #tpu.memory_space<vmem>>, %arg5: memref<128x128xbf16, #tpu.memory_space<vmem>>, %arg6: memref<1x128xf32, #tpu.memory_space<vmem>>, %arg7: memref<128x256xbf16, #tpu.memory_space<vmem>>, %arg8: memref<1x256xf32, #tpu.memory_space<vmem>>, %arg9: memref<128x128xbf16, #tpu.memory_space<vmem>>, %arg10: memref<1x128xf32, #tpu.memory_space<vmem>>, %arg11: memref<8x128xf32, #tpu.memory_space<vmem>>, %arg12: memref<8x128xf32, #tpu.memory_space<vmem>>, %arg13: memref<8x128xf32, #tpu.memory_space<vmem>>, %arg14: memref<8x128xf32, #tpu.memory_space<vmem>>, %arg15: memref<8x128xf32, #tpu.memory_space<vmem>>) attributes {dimension_semantics = [#tpu.dimension_semantics<parallel>, #tpu.dimension_semantics<arbitrary>], iteration_bounds = array<i64: 1, 1>, scalar_prefetch = 0 : i64, scratch_operands = 1 : i64, tpu.core_type = #tpu.core_type<tc>, window_params = [{transform_indices = @transform_0, window_bounds = array<i64: 8, 256>}, {transform_indices = @transform_1, window_bounds = array<i64: 256, 128>}, {pipeline_mode = #tpu.pipeline_mode<synchronous>, transform_indices = @transform_2, window_bounds = array<i64: 1, 128>}, {pipeline_mode = #tpu.pipeline_mode<synchronous>, transform_indices = @transform_3, window_bounds = array<i64: 128, 128>}, {pipeline_mode = #tpu.pipeline_mode<synchronous>, transform_indices = @transform_4, window_bounds = array<i64: 1, 128>}, {pipeline_mode = #tpu.pipeline_mode<synchronous>, transform_indices = @transform_5, window_bounds = array<i64: 128, 256>}, {pipeline_mode = #tpu.pipeline_mode<synchronous>, transform_indices = @transform_6, window_bounds = array<i64: 1, 256>}, {pipeline_mode = #tpu.pipeline_mode<synchronous>, transform_indices = @transform_7, window_bounds = array<i64: 128, 128>}, {pipeline_mode = #tpu.pipeline_mode<synchronous>, transform_indices = @transform_8, window_bounds = array<i64: 1, 128>}, {transform_indices = @transform_9, window_bounds = array<i64: 8, 128>}, {transform_indices = @transform_10, window_bounds = array<i64: 8, 128>}, {transform_indices = @transform_11, window_bounds = array<i64: 8, 128>}, {transform_indices = @transform_12, window_bounds = array<i64: 8, 128>}]} {
    %c0_i32 = arith.constant 0 : i32
    %0 = arith.cmpi eq, %arg1, %c0_i32 : i32
    %1 = arith.extui %0 : i1 to i32
    %c0_i32_0 = arith.constant 0 : i32
    %2 = arith.cmpi ne, %1, %c0_i32_0 : i32
    scf.if %2 {
      %cst_10 = arith.constant 0.000000e+00 : f32
      %13 = vector.broadcast %cst_10 : f32 to vector<8x128xf32>
      %c0_11 = arith.constant 0 : index
      %c0_12 = arith.constant 0 : index
      %14 = vector.load %arg15[%c0_11, %c0_12] : memref<8x128xf32, #tpu.memory_space<vmem>>, vector<8x128xf32>
      tpu.vector_store %arg15[%c0_11, %c0_12], %13 {strides = array<i32>} : memref<8x128xf32, #tpu.memory_space<vmem>>, vector<8x128xf32>,
    } else {
    }
    %c0 = arith.constant 0 : index
    %c0_1 = arith.constant 0 : index
    %3 = vector.load %arg2[%c0, %c0_1] : memref<8x256xf32, #tpu.memory_space<vmem>>, vector<8x256xf32>
    %4 = arith.truncf %3 : vector<8x256xf32> to vector<8x256xbf16>
    %c0_2 = arith.constant 0 : index
    %c0_3 = arith.constant 0 : index
    %5 = vector.load %arg15[%c0_2, %c0_3] : memref<8x128xf32, #tpu.memory_space<vmem>>, vector<8x128xf32>
    %c0_4 = arith.constant 0 : index
    %c0_5 = arith.constant 0 : index
    %6 = vector.load %arg3[%c0_4, %c0_5] : memref<256x128xbf16, #tpu.memory_space<vmem>>, vector<256x128xbf16>
    %cst = arith.constant dense<0.000000e+00> : vector<8x128xf32>
    %7 = tpu.matmul %4, %6, %cst {dimension_numbers = #tpu.dot_dimension_numbers<[1], [0], [0], [1], [0, 0, 1, 1], [], []>} : vector<8x256xbf16>, vector<256x128xbf16>, vector<8x128xf32> -> vector<8x128xf32>
    %8 = arith.addf %5, %7 : vector<8x128xf32>
    %c0_6 = arith.constant 0 : index
    %c0_7 = arith.constant 0 : index
    %9 = vector.load %arg15[%c0_6, %c0_7] : memref<8x128xf32, #tpu.memory_space<vmem>>, vector<8x128xf32>
    tpu.vector_store %arg15[%c0_6, %c0_7], %8 {strides = array<i32>} : memref<8x128xf32, #tpu.memory_space<vmem>>, vector<8x128xf32>,
    %c0_i32_8 = arith.constant 0 : i32
    %10 = arith.cmpi eq, %arg1, %c0_i32_8 : i32
    %11 = arith.extui %10 : i1 to i32
    %c0_i32_9 = arith.constant 0 : i32
    %12 = arith.cmpi ne, %11, %c0_i32_9 : i32
    scf.if %12 {
      %c0_10 = arith.constant 0 : index
      %c0_11 = arith.constant 0 : index
      %13 = vector.load %arg15[%c0_10, %c0_11] : memref<8x128xf32, #tpu.memory_space<vmem>>, vector<8x128xf32>
      %c0_12 = arith.constant 0 : index
      %c0_13 = arith.constant 0 : index
      %14 = vector.load %arg4[%c0_12, %c0_13] : memref<1x128xf32, #tpu.memory_space<vmem>>, vector<1x128xf32>
      %15 = vector.broadcast %14 : vector<1x128xf32> to vector<8x128xf32>
      %16 = arith.addf %13, %15 : vector<8x128xf32>
      %cst_14 = arith.constant 0.000000e+00 : f32
      %17 = vector.broadcast %cst_14 : f32 to vector<8x128xf32>
      %18 = arith.maximumf %16, %17 : vector<8x128xf32>
      %19 = arith.truncf %18 : vector<8x128xf32> to vector<8x128xbf16>
      %c0_15 = arith.constant 0 : index
      %c0_16 = arith.constant 0 : index
      %20 = vector.load %arg5[%c0_15, %c0_16] : memref<128x128xbf16, #tpu.memory_space<vmem>>, vector<128x128xbf16>
      %cst_17 = arith.constant dense<0.000000e+00> : vector<8x128xf32>
      %21 = tpu.matmul %19, %20, %cst_17 {dimension_numbers = #tpu.dot_dimension_numbers<[1], [0], [0], [1], [0, 0, 1, 1], [], []>} : vector<8x128xbf16>, vector<128x128xbf16>, vector<8x128xf32> -> vector<8x128xf32>
      %c0_18 = arith.constant 0 : index
      %c0_19 = arith.constant 0 : index
      %22 = vector.load %arg6[%c0_18, %c0_19] : memref<1x128xf32, #tpu.memory_space<vmem>>, vector<1x128xf32>
      %23 = vector.broadcast %22 : vector<1x128xf32> to vector<8x128xf32>
      %24 = arith.addf %21, %23 : vector<8x128xf32>
      %cst_20 = arith.constant 0.000000e+00 : f32
      %25 = vector.broadcast %cst_20 : f32 to vector<8x128xf32>
      %26 = arith.maximumf %24, %25 : vector<8x128xf32>
      %27 = arith.truncf %26 : vector<8x128xf32> to vector<8x128xbf16>
      %c0_21 = arith.constant 0 : index
      %c0_22 = arith.constant 0 : index
      %28 = vector.load %arg7[%c0_21, %c0_22] : memref<128x256xbf16, #tpu.memory_space<vmem>>, vector<128x256xbf16>
      %cst_23 = arith.constant dense<0.000000e+00> : vector<8x256xf32>
      %29 = tpu.matmul %27, %28, %cst_23 {dimension_numbers = #tpu.dot_dimension_numbers<[1], [0], [0], [1], [0, 0, 1, 1], [], []>} : vector<8x128xbf16>, vector<128x256xbf16>, vector<8x256xf32> -> vector<8x256xf32>
      %c0_24 = arith.constant 0 : index
      %c0_25 = arith.constant 0 : index
      %30 = vector.load %arg8[%c0_24, %c0_25] : memref<1x256xf32, #tpu.memory_space<vmem>>, vector<1x256xf32>
      %31 = vector.broadcast %30 : vector<1x256xf32> to vector<8x256xf32>
      %32 = arith.addf %29, %31 : vector<8x256xf32>
      %33 = vector.extract_strided_slice %32 {offsets = [0, 0], sizes = [8, 128], strides = [1, 1]} : vector<8x256xf32> to vector<8x128xf32>
      %34 = vector.extract_strided_slice %32 {offsets = [0, 128], sizes = [8, 128], strides = [1, 1]} : vector<8x256xf32> to vector<8x128xf32>
      %35 = math.exp %34 : vector<8x128xf32>
      %c0_26 = arith.constant 0 : index
      %c0_27 = arith.constant 0 : index
      %36 = vector.load %arg11[%c0_26, %c0_27] : memref<8x128xf32, #tpu.memory_space<vmem>>, vector<8x128xf32>
      %37 = arith.mulf %36, %35 : vector<8x128xf32>
      %38 = arith.addf %37, %33 : vector<8x128xf32>
      %39 = arith.truncf %38 : vector<8x128xf32> to vector<8x128xbf16>
      %c0_28 = arith.constant 0 : index
      %c0_29 = arith.constant 0 : index
      %40 = vector.load %arg9[%c0_28, %c0_29] : memref<128x128xbf16, #tpu.memory_space<vmem>>, vector<128x128xbf16>
      %cst_30 = arith.constant dense<0.000000e+00> : vector<8x128xf32>
      %41 = tpu.matmul %39, %40, %cst_30 {dimension_numbers = #tpu.dot_dimension_numbers<[1], [0], [0], [1], [0, 0, 1, 1], [], []>} : vector<8x128xbf16>, vector<128x128xbf16>, vector<8x128xf32> -> vector<8x128xf32>
      %c0_31 = arith.constant 0 : index
      %c0_32 = arith.constant 0 : index
      %42 = vector.load %arg10[%c0_31, %c0_32] : memref<1x128xf32, #tpu.memory_space<vmem>>, vector<1x128xf32>
      %43 = vector.broadcast %42 : vector<1x128xf32> to vector<8x128xf32>
      %44 = arith.addf %41, %43 : vector<8x128xf32>
      %cst_33 = arith.constant dense<0xFF800000> : vector<8xf32>
      %45 = vector.multi_reduction <maximumf>, %44, %cst_33 [1] : vector<8x128xf32> to vector<8xf32>
      %46 = vector.shape_cast %45 : vector<8xf32> to vector<8x1xf32>
      %47 = vector.broadcast %46 : vector<8x1xf32> to vector<8x128xf32>
      %48 = arith.subf %44, %47 : vector<8x128xf32>
      %49 = math.exp %48 : vector<8x128xf32>
      %cst_34 = arith.constant dense<0.000000e+00> : vector<8xf32>
      %50 = vector.multi_reduction <add>, %49, %cst_34 [1] : vector<8x128xf32> to vector<8xf32>
      %51 = vector.shape_cast %50 : vector<8xf32> to vector<8x1xf32>
      %52 = vector.broadcast %51 : vector<8x1xf32> to vector<8x128xf32>
      %53 = arith.divf %49, %52 : vector<8x128xf32>
      %c0_35 = arith.constant 0 : index
      %c0_36 = arith.constant 0 : index
      %54 = vector.load %arg12[%c0_35, %c0_36] : memref<8x128xf32, #tpu.memory_space<vmem>>, vector<8x128xf32>
      tpu.vector_store %arg12[%c0_35, %c0_36], %33 {strides = array<i32>} : memref<8x128xf32, #tpu.memory_space<vmem>>, vector<8x128xf32>,
      %c0_37 = arith.constant 0 : index
      %c0_38 = arith.constant 0 : index
      %55 = vector.load %arg13[%c0_37, %c0_38] : memref<8x128xf32, #tpu.memory_space<vmem>>, vector<8x128xf32>
      tpu.vector_store %arg13[%c0_37, %c0_38], %35 {strides = array<i32>} : memref<8x128xf32, #tpu.memory_space<vmem>>, vector<8x128xf32>,
      %c0_39 = arith.constant 0 : index
      %c0_40 = arith.constant 0 : index
      %56 = vector.load %arg14[%c0_39, %c0_40] : memref<8x128xf32, #tpu.memory_space<vmem>>, vector<8x128xf32>
      tpu.vector_store %arg14[%c0_39, %c0_40], %53 {strides = array<i32>} : memref<8x128xf32, #tpu.memory_space<vmem>>, vector<8x128xf32>,
    } else {
    }
    return
  }
  func.func @transform_0(%arg0: i32, %arg1: i32) -> (i32, i32) {
    %c0_i32 = arith.constant 0 : i32
    return %arg0, %arg1 : i32, i32
  }
  func.func @transform_1(%arg0: i32, %arg1: i32) -> (i32, i32) {
    %c0_i32 = arith.constant 0 : i32
    %c0_i32_0 = arith.constant 0 : i32
    return %arg1, %c0_i32 : i32, i32
  }
  func.func @transform_2(%arg0: i32, %arg1: i32) -> (i32, i32) {
    %c0_i32 = arith.constant 0 : i32
    %c0_i32_0 = arith.constant 0 : i32
    %c0_i32_1 = arith.constant 0 : i32
    return %c0_i32, %c0_i32_0 : i32, i32
  }
  func.func @transform_3(%arg0: i32, %arg1: i32) -> (i32, i32) {
    %c0_i32 = arith.constant 0 : i32
    %c0_i32_0 = arith.constant 0 : i32
    %c0_i32_1 = arith.constant 0 : i32
    return %c0_i32, %c0_i32_0 : i32, i32
  }
  func.func @transform_4(%arg0: i32, %arg1: i32) -> (i32, i32) {
    %c0_i32 = arith.constant 0 : i32
    %c0_i32_0 = arith.constant 0 : i32
    %c0_i32_1 = arith.constant 0 : i32
    return %c0_i32, %c0_i32_0 : i32, i32
  }
  func.func @transform_5(%arg0: i32, %arg1: i32) -> (i32, i32) {
    %c0_i32 = arith.constant 0 : i32
    %c0_i32_0 = arith.constant 0 : i32
    %c0_i32_1 = arith.constant 0 : i32
    return %c0_i32, %c0_i32_0 : i32, i32
  }
  func.func @transform_6(%arg0: i32, %arg1: i32) -> (i32, i32) {
    %c0_i32 = arith.constant 0 : i32
    %c0_i32_0 = arith.constant 0 : i32
    %c0_i32_1 = arith.constant 0 : i32
    return %c0_i32, %c0_i32_0 : i32, i32
  }
  func.func @transform_7(%arg0: i32, %arg1: i32) -> (i32, i32) {
    %c0_i32 = arith.constant 0 : i32
    %c0_i32_0 = arith.constant 0 : i32
    %c0_i32_1 = arith.constant 0 : i32
    return %c0_i32, %c0_i32_0 : i32, i32
  }
  func.func @transform_8(%arg0: i32, %arg1: i32) -> (i32, i32) {
    %c0_i32 = arith.constant 0 : i32
    %c0_i32_0 = arith.constant 0 : i32
    %c0_i32_1 = arith.constant 0 : i32
    return %c0_i32, %c0_i32_0 : i32, i32
  }
  func.func @transform_9(%arg0: i32, %arg1: i32) -> (i32, i32) {
    %c0_i32 = arith.constant 0 : i32
    %c0_i32_0 = arith.constant 0 : i32
    return %arg0, %c0_i32 : i32, i32
  }
  func.func @transform_10(%arg0: i32, %arg1: i32) -> (i32, i32) {
    %c0_i32 = arith.constant 0 : i32
    %c0_i32_0 = arith.constant 0 : i32
    return %arg0, %c0_i32 : i32, i32
  }
  func.func @transform_11(%arg0: i32, %arg1: i32) -> (i32, i32) {
    %c0_i32 = arith.constant 0 : i32
    %c0_i32_0 = arith.constant 0 : i32
    return %arg0, %c0_i32 : i32, i32
  }
  func.func @transform_12(%arg0: i32, %arg1: i32) -> (i32, i32) {
    %c0_i32 = arith.constant 0 : i32
    %c0_i32_0 = arith.constant 0 : i32
    return %arg0, %c0_i32 : i32, i32
  }
}

</mosaic_0001>

<bundles_post_ra>
// kernel: tpu_custom_call.1
= control target key start
LH: loop header
LB: loop body
LE: loop exit
PB: predicated region body
PF: predicated region fallthrough
CT: control target
= control target key end

     0   :  { %18 = vsyncpa [#allocation4], 0  ;;  %s1262_s0 = inlined_call_operand.hbm [shape: f32[8,256], index: 0, kind: input, shape index: {}]   ;;  %s1263_s1 = inlined_call_operand.hbm [shape: bf16[256,128], index: 1, kind: input, shape index: {}]   ;;  %s1264_s2 = inlined_call_operand.vmem [shape: f32[1,128], index: 2, kind: input, shape index: {}]   ;;  %s1265_s3 = inlined_call_operand.hbm [shape: bf16[128,128], index: 3, kind: input, shape index: {}]   ;;  %s1266_s4 = inlined_call_operand.vmem [shape: f32[1,128], index: 4, kind: input, shape index: {}]   ;;  %s1267_s5 = inlined_call_operand.hbm [shape: bf16[128,256], index: 5, kind: input, shape index: {}]   ;;  %s1268_s6 = inlined_call_operand.vmem [shape: f32[1,256], index: 6, kind: input, shape index: {}]   ;;  %s1269_s7 = inlined_call_operand.hbm [shape: bf16[128,128], index: 7, kind: input, shape index: {}]   ;;  %s1270_s8 = inlined_call_operand.vmem [shape: f32[1,128], index: 8, kind: input, shape index: {}]   ;;  %s1271_s9 = inlined_call_operand.vmem [shape: f32[8,128], index: 9, kind: input, shape index: {}]   ;;  %s1272_s10 = inlined_call_operand.hbm [shape: f32[8,128], index: 10, kind: output, shape index: {0}]   ;;  %s1273_s11 = inlined_call_operand.hbm [shape: f32[8,128], index: 11, kind: output, shape index: {1}]   ;;  %s1274_s12 = inlined_call_operand.hbm [shape: f32[8,128], index: 12, kind: output, shape index: {2}]  }
   0x1   :  { %19 = vsyncpa [#allocation7], 0 }
   0x2   :  { %20 = vsyncpa [#allocation10], 0 }
   0x3   :  { %21 = vsyncpa [#allocation5], 0 }
   0x4   :  { %22 = vsyncpa [#allocation14], 0  ;;  %s1114_s21 = smov [#allocation6]  }
   0x5   :  { %s38_s22 = sshll.u32 %s1114_s21, 4  ;;  %s39_s22 = int_to_ptr.vmem [resolvable:$true] %s38_s22 }
   0x6   :  { %s952_s23 = scalar_lea.vmem %s39_s22, 2048  ;;  %p957_p1 = scmp.lt.s32.totalorder %s39_s22, %s39_s22 }
   0x7   :  { %p953_p0 = scmp.ne.s32.totalorder %s39_s22, %s952_s23  ;;  %p958_p2 = scmp.lt.s32.totalorder %s952_s23, %s952_s23 }
   0x9   :  { %p959_p3 = por %p958_p2, %p957_p1 }
   0xb   :  { %p960_p4 = pnand %p959_p3, %p953_p0 }
   0xd   :  { %963 = shalt.err (!%p960_p4)
}
   0xe   :  { %s1115_s24 = smov 64   ;;  %s1116_s25 = smov 4  }
   0xf   :  { %44 = dma.hbm_to_vmem [thread:$0]  %s1263_s1, 2048, %s39_s22, [#allocation7], %s1115_s24, %s1115_s24, %s1116_s25  }
  0x10   :  { %s1117_s28 = smov [#allocation9]  }
  0x11   :  { %s66_s29 = sshll.u32 %s1117_s28, 4  ;;  %s67_s29 = int_to_ptr.vmem [resolvable:$true] %s66_s29 }
  0x12   :  { %s972_s30 = scalar_lea.vmem %s67_s29, 2048  ;;  %p977_p6 = scmp.lt.s32.totalorder %s67_s29, %s67_s29 }
  0x13   :  { %p973_p5 = scmp.ne.s32.totalorder %s67_s29, %s972_s30  ;;  %p978_p7 = scmp.lt.s32.totalorder %s972_s30, %s972_s30 }
  0x15   :  { %p979_p8 = por %p978_p7, %p977_p6 }
  0x17   :  { %p980_p9 = pnand %p979_p8, %p973_p5 }
  0x19   :  { %983 = shalt.err (!%p980_p9)
}
  0x1a   :  { %s1118_s13 = smov 128   ;;  %s1119_s14 = smov 8  }
  0x1b   :  { %72 = dma.hbm_to_vmem [thread:$0]  %s1267_s5, 2048, %s67_s29, [#allocation10], %s1118_s13, %s1118_s13, %s1119_s14  }
  0x1c   :  { %s1120_s17 = smov [#allocation3]   ;;  %s1121_s19 = smov [#allocation8]  }
  0x1d   :  { %s29_s18 = sshll.u32 %s1120_s17, 4  ;;  %s52_s1 = sshll.u32 %s1121_s19, 4  ;;  %s30_s18 = int_to_ptr.vmem [resolvable:$true] %s29_s18  ;;  %s53_s1 = int_to_ptr.vmem [resolvable:$true] %s52_s1 }
  0x1e   :  { %s992_s20 = scalar_lea.vmem %s30_s18, 256  ;;  %p997_p11 = scmp.lt.s32.totalorder %s30_s18, %s30_s18 }
  0x1f   :  { %p993_p10 = scmp.ne.s32.totalorder %s30_s18, %s992_s20  ;;  %p998_p12 = scmp.lt.s32.totalorder %s992_s20, %s992_s20 }
  0x21   :  { %p999_p13 = por %p998_p12, %p997_p11 }
  0x23   :  { %p1000_p0 = pnand %p999_p13, %p993_p10 }
  0x25   :  { %1003 = shalt.err (!%p1000_p0)
}
  0x26   :  { %32 = dma.hbm_to_vmem [thread:$0]  %s1262_s0, 256, %s30_s18, [#allocation4]  }
  0x27   :  { %s1012_s23 = scalar_lea.vmem %s53_s1, 1024  ;;  %p1017_p2 = scmp.lt.s32.totalorder %s53_s1, %s53_s1 }
  0x28   :  { %p1013_p1 = scmp.ne.s32.totalorder %s53_s1, %s1012_s23  ;;  %p1018_p3 = scmp.lt.s32.totalorder %s1012_s23, %s1012_s23 }
  0x2a   :  { %p1019_p4 = por %p1018_p3, %p1017_p2 }
  0x2c   :  { %p1020_p5 = pnand %p1019_p4, %p1013_p1 }
  0x2e   :  { %1023 = shalt.err (!%p1020_p5)
}
  0x2f   :  { %58 = dma.hbm_to_vmem [thread:$0]  %s1265_s3, 1024, %s53_s1, [#allocation7], %s1115_s24, %s1115_s24, %s1116_s25  }
  0x30   :  { %s1122_s27 = smov [#allocation11]  }
  0x31   :  { %s80_s28 = sshll.u32 %s1122_s27, 4  ;;  %s81_s28 = int_to_ptr.vmem [resolvable:$true] %s80_s28 }
  0x32   :  { %s1032_s29 = scalar_lea.vmem %s81_s28, 1024  ;;  %p1037_p7 = scmp.lt.s32.totalorder %s81_s28, %s81_s28 }
  0x33   :  { %p1033_p6 = scmp.ne.s32.totalorder %s81_s28, %s1032_s29  ;;  %p1038_p8 = scmp.lt.s32.totalorder %s1032_s29, %s1032_s29 }
  0x35   :  { %p1039_p9 = por %p1038_p8, %p1037_p7 }
  0x37   :  { %p1040_p10 = pnand %p1039_p9, %p1033_p6 }
  0x39   :  { %1043 = shalt.err (!%p1040_p10)
}
  0x3a   :  { %86 = dma.hbm_to_vmem [thread:$0]  %s1269_s7, 1024, %s81_s28, [#allocation10], %s1115_s24, %s1115_s24, %s1116_s25  }
  0x3b   :  { %1104 = dma.done.wait [#allocation4], 256  }
  0x3c   :  { %1105 = vsyncadd [#allocation4], 4294967040 }
  0x3d   :  { %1106 = dma.done.wait [#allocation7], 3072  }
  0x3e   :  { %1107 = vsyncadd [#allocation7], 4294964224 }
  0x3f   :  { %1108 = dma.done.wait [#allocation10], 3072  }
  0x40   :  { %1109 = vsyncadd [#allocation10], 4294964224  ;;  %v1123_v0 = vmov 0.0   ;;  %v882_v1 = vld [vmem:[#allocation6 + $0x78] sm:$0xff]   ;;  %v884_v3 = vld [vmem:[#allocation6 + $0x70] sm:$0xff]   ;;  %vm1124_vm0 = vmmov 0  }
  0x41   :  { %827 = vmatprep.subr.bf16.mxu1 %v1123_v0  ;;  %v883_v2 = vld [vmem:[#allocation6 + $0x38] sm:$0xff]   ;;  %787 = vmatprep.subr.bf16.mxu0 %v882_v1  ;;  %v885_v4 = vld [vmem:[#allocation6 + $0x30] sm:$0xff]   ;;  %v886_v5 = vld [vmem:[#allocation6 + $0x68] sm:$0xff]   ;;  %v1125_v54 = vmov 0   ;;  %s1127_s17 = smov [#allocation12]  }
  0x42   :  { %788 = vmatpush3.bf16.msra.mxu0 %v883_v2  ;;  %v887_v6 = vld [vmem:[#allocation6 + $0x28] sm:$0xff]   ;;  %v888_v7 = vld [vmem:[#allocation6 + $0x60] sm:$0xff]   ;;  %v890_v9 = vld [vmem:[#allocation6 + $0x58] sm:$0xff]   ;;  %843 = vmatprep.mubr.msk.bf16.mxu1 %vm1124_vm0, %v1123_v0  ;;  %s698_s18 = sshll.u32 %s1127_s17, 4  ;;  %s699_s18 = int_to_ptr.vmem [resolvable:$true] %s698_s18 }
  0x43   :  { %789 = vmatprep.subr.bf16.mxu0 %v884_v3  ;;  %v889_v8 = vld [vmem:[#allocation6 + $0x20] sm:$0xff]   ;;  %v891_v10 = vld [vmem:[#allocation6 + $0x18] sm:$0xff]   ;;  %v892_v11 = vld [vmem:[#allocation6 + $0x50] sm:$0xff]  }
  0x44   :  { %v113_v12 = vld [vmem:[#allocation3 + $0x8] sm:$0xff]  ;;  %v893_v15 = vld [vmem:[#allocation6 + $0x10] sm:$0xff]   ;;  %v894_v16 = vld [vmem:[#allocation6 + $0x48] sm:$0xff]  }
  0x45   :  { %v115_v13 = vpack.c.bf16 %v113_v12, %v113_v12  ;;  %v898_v14 = vld [vmem:[#allocation8 + $0x38] sm:$0xff]   ;;  %v899_v17 = vld [vmem:[#allocation8 + $0x30] sm:$0xff]   ;;  %v895_v18 = vld [vmem:[#allocation6 + $0x8] sm:$0xff]  }
  0x46   :  { %790 = vmatpush3.bf16.msra.mxu0 %v885_v4  ;;  %828 = vmatpush3.bf16.msra.mxu1 %v898_v14  ;;  %v896_v19 = vld [vmem:[#allocation6 + $0x40] sm:$0xff]   ;;  %v900_v20 = vld [vmem:[#allocation8 + $0x28] sm:$0xff]   ;;  %v112_v22 = vld [vmem:[#allocation3] sm:$0xff] }
  0x47   :  { %791 = vmatprep.subr.bf16.mxu0 %v886_v5  ;;  %277 = vmatprep.mubr.bf16.mxu0 %v115_v13  ;;  %v897_v21 = vld [vmem:[#allocation6] sm:$0xff]   ;;  %v114_v24 = vpack.c.bf16 %v112_v22, %v112_v22  ;;  %v902_v25 = vld [vmem:[#allocation8 + $0x18] sm:$0xff]   ;;  %v903_v26 = vld [vmem:[#allocation8 + $0x10] sm:$0xff]  }
  0x48   :  { %829 = vmatprep.subr.bf16.mxu1 %v1123_v0  ;;  %v901_v23 = vld [vmem:[#allocation8 + $0x20] sm:$0xff]   ;;  %v904_v27 = vld [vmem:[#allocation8 + $0x8] sm:$0xff]   ;;  %v906_v29 = vld [vmem:[#allocation9 + $0x70] ss:$8 sps:$4 sm:$0xff]  }
  0x49   :  { %v905_v28 = vld [vmem:[#allocation8] sm:$0xff]   ;;  %v908_v30 = vld [vmem:[#allocation9 + $0x74] ss:$8 sps:$4 sm:$0xff]   ;;  %v912_v34 = vld [vmem:[#allocation9 + $0x50] ss:$8 sps:$4 sm:$0xff]  }
  0x4a   :  { %792 = vmatpush3.bf16.msra.mxu0 %v887_v6  ;;  %830 = vmatpush3.bf16.msra.mxu1 %v899_v17  ;;  %v911_v31 = vld [vmem:[#allocation9 + $0x64] ss:$8 sps:$4 sm:$0xff]   ;;  %v909_v32 = vld [vmem:[#allocation9 + $0x60] ss:$8 sps:$4 sm:$0xff]   ;;  %v914_v33 = vld [vmem:[#allocation9 + $0x54] ss:$8 sps:$4 sm:$0xff]  }
  0x4b   :  { %793 = vmatprep.subr.bf16.mxu0 %v888_v7  ;;  %831 = vmatprep.subr.bf16.mxu1 %v1123_v0  ;;  %v917_v35 = vld [vmem:[#allocation9 + $0x44] ss:$8 sps:$4 sm:$0xff]   ;;  %v915_v36 = vld [vmem:[#allocation9 + $0x40] ss:$8 sps:$4 sm:$0xff]   ;;  %v920_v37 = vld [vmem:[#allocation9 + $0x34] ss:$8 sps:$4 sm:$0xff]  }
  0x4c   :  { %v918_v38 = vld [vmem:[#allocation9 + $0x30] ss:$8 sps:$4 sm:$0xff]   ;;  %v923_v39 = vld [vmem:[#allocation9 + $0x24] ss:$8 sps:$4 sm:$0xff]   ;;  %v921_v40 = vld [vmem:[#allocation9 + $0x20] ss:$8 sps:$4 sm:$0xff]  }
  0x4d   :  { %v926_v41 = vld [vmem:[#allocation9 + $0x14] ss:$8 sps:$4 sm:$0xff]   ;;  %v924_v42 = vld [vmem:[#allocation9 + $0x10] ss:$8 sps:$4 sm:$0xff]   ;;  %v929_v52 = vld [vmem:[#allocation9 + $0x4] ss:$8 sps:$4 sm:$0xff]  }
  0x4e   :  { %794 = vmatpush3.bf16.msra.mxu0 %v889_v8  ;;  %832 = vmatpush3.bf16.msra.mxu1 %v900_v20  ;;  %v752_v45 = vld [vmem:[%s1264_s2] ss:$0 sm:$0xff]  ;;  %v927_v53 = vld [vmem:[#allocation9] ss:$8 sps:$4 sm:$0xff]   ;;  %v930_v55 = vld [vmem:[#allocation11 + $0x38] sm:$0xff]   ;;  %v432_v8 = vlaneseq }
  0x4f   :  { %795 = vmatprep.subr.bf16.mxu0 %v890_v9  ;;  %833 = vmatprep.subr.bf16.mxu1 %v1123_v0  ;;  %v753_v56 = vld [vmem:[%s1266_s4] ss:$0 sm:$0xff]  ;;  %v932_v2 = vld [vmem:[#allocation11 + $0x28] sm:$0xff]   ;;  %v933_v3 = vld [vmem:[#allocation11 + $0x20] sm:$0xff]  }
  0x50   :  { %v931_v1 = vld [vmem:[#allocation11 + $0x30] sm:$0xff]   ;;  %v934_v4 = vld [vmem:[#allocation11 + $0x18] sm:$0xff]   ;;  %v936_v6 = vld [vmem:[#allocation11 + $0x8] sm:$0xff]   ;;  %v433_v9 = vshrl.u32 %v432_v8, 7 }
  0x51   :  { %v935_v5 = vld [vmem:[#allocation11 + $0x10] sm:$0xff]   ;;  %v937_v7 = vld [vmem:[#allocation11] sm:$0xff]  }
  0x52   :  { %796 = vmatpush3.bf16.msra.mxu0 %v891_v10  ;;  %834 = vmatpush3.bf16.msra.mxu1 %v901_v23  ;;  %v434_v10 = vsub.s32 0, %v433_v9  ;;  %v438_v12 = vsub.s32 1, %v433_v9 }
  0x53   :  { %797 = vmatprep.subr.bf16.mxu0 %v892_v11  ;;  %835 = vmatprep.subr.bf16.mxu1 %v1123_v0  ;;  %v430_v11 = vld [vmem:[%s1268_s6] sm:$0x3] }
  0x54   :  { %v435_v13 = vrot.slane %v430_v11, %v434_v10  ;;  %v439_v14 = vrot.slane %v430_v11, %v438_v12 }
  0x56   :  { %798 = vmatpush3.bf16.msra.mxu0 %v893_v15  ;;  %836 = vmatpush3.bf16.msra.mxu1 %v902_v25 }
  0x57   :  { %799 = vmatprep.subr.bf16.mxu0 %v894_v16  ;;  %837 = vmatprep.subr.bf16.mxu1 %v1123_v0 }
  0x5a   :  { %800 = vmatpush3.bf16.msra.mxu0 %v895_v18  ;;  %838 = vmatpush3.bf16.msra.mxu1 %v903_v26  ;;  %v778_v26 = vld [vmem:[%s1270_s8] ss:$0 sm:$0xff] }
  0x5b   :  { %801 = vmatprep.subr.bf16.mxu0 %v896_v19  ;;  %839 = vmatprep.subr.bf16.mxu1 %v1123_v0 }
  0x5e   :  { %802 = vmatpush3.bf16.msra.mxu0 %v897_v21  ;;  %840 = vmatpush3.bf16.msra.mxu1 %v904_v27  ;;  %v565_v21 = vld [vmem:[%s1271_s9] sm:$0xff]  ;;  %s1126_s9 = smov [#allocation13]  }
  0x5f   :  { %841 = vmatprep.subr.bf16.mxu1 %v1123_v0  ;;  %522 = vmatprep.subr.bf16.mxu0 %v908_v30  ;;  %s708_s16 = sshll.u32 %s1126_s9, 4  ;;  %s709_s16 = int_to_ptr.vmem [resolvable:$true] %s708_s16 }
  0x60   :  { %s1044_s19 = scalar_lea.vmem %s709_s16, 128  ;;  %p1049_p12 = scmp.lt.s32.totalorder %s709_s16, %s709_s16 }
  0x61   :  { %278 = vmatmul.mubr.bf16.vlgmr.msra.gmra.mxu0 %v114_v24  ;;  %p1045_p11 = scmp.ne.s32.totalorder %s709_s16, %s1044_s19  ;;  %p1050_p13 = scmp.lt.s32.totalorder %s1044_s19, %s1044_s19 }
  0x62   :  { %842 = vmatpush3.bf16.msra.mxu1 %v905_v28  ;;  %523 = vmatpush1.bf16.msra.mxu0 %v906_v29 }
  0x63   :  { %847 = vmatprep.subr.bf16.mxu1 %v1123_v0  ;;  %524 = vmatprep.subr.bf16.mxu0 %v911_v31  ;;  %p1051_p0 = por %p1050_p13, %p1049_p12 }
  0x64   :  { %554 = vmatprep.mubr.bf16.mxu0 %v1125_v54 }
  0x65   :  { %p1052_p1 = pnand %p1051_p0, %p1045_p11 }
  0x66   :  { %525 = vmatpush1.bf16.msra.mxu0 %v909_v32 }
  0x67   :  { %526 = vmatprep.subr.bf16.mxu0 %v914_v33 }
  0x6a   :  { %527 = vmatpush1.bf16.msra.mxu0 %v912_v34 }
  0x6b   :  { %528 = vmatprep.subr.bf16.mxu0 %v917_v35 }
  0x6e   :  { %529 = vmatpush1.bf16.msra.mxu0 %v915_v36 }
  0x6f   :  { %530 = vmatprep.subr.bf16.mxu0 %v920_v37 }
  0x72   :  { %531 = vmatpush1.bf16.msra.mxu0 %v918_v38 }
  0x73   :  { %532 = vmatprep.subr.bf16.mxu0 %v923_v39 }
  0x76   :  { %533 = vmatpush1.bf16.msra.mxu0 %v921_v40 }
  0x77   :  { %534 = vmatprep.subr.bf16.mxu0 %v926_v41 }
  0x7a   :  { %535 = vmatpush1.bf16.msra.mxu0 %v924_v42 }
  0x7b   :  { %536 = vmatprep.subr.bf16.mxu0 %v929_v52 }
  0x7e   :  { %537 = vmatpush1.bf16.msra.mxu0 %v927_v53 }
 0x121   :  { %v803_v43 = vpop.f32.mrf.mxu0 }
 0x123   :  { %v804_v44 = vpop.f32.mrf.mxu0 }
 0x124   :  { %v805_v46 = vadd.f32 %v804_v44, %v803_v43 }
 0x125   :  { %v806_v47 = vpop.f32.mrf.mxu0 }
 0x126   :  { %v298_v48 = vadd.f32 %v805_v46, %v752_v45 }
 0x127   :  { %v807_v49 = vpop.f32.mrf.mxu0 }
 0x128   :  { %v299_v50 = vmax.f32 %v298_v48, 0.0 }
 0x12a   :  { %v300_v51 = vpack.c.bf16 %v299_v50, %v299_v50 }
 0x12c   :  { %844 = vmatmul.mubr.bf16.vlgmr.msra.gmra.mxu1 %v300_v51 }
 0x12d   :  { %863 = vmatprep.mubr.msk.bf16.mxu1 %vm1124_vm0, %v1123_v0  ;;  %848 = vmatpush3.bf16.msra.mxu1 %v930_v55 }
 0x12e   :  { %849 = vmatprep.subr.bf16.mxu1 %v1123_v0 }
 0x131   :  { %850 = vmatpush3.bf16.msra.mxu1 %v931_v1 }
 0x132   :  { %851 = vmatprep.subr.bf16.mxu1 %v1123_v0 }
 0x135   :  { %852 = vmatpush3.bf16.msra.mxu1 %v932_v2 }
 0x136   :  { %853 = vmatprep.subr.bf16.mxu1 %v1123_v0 }
 0x139   :  { %854 = vmatpush3.bf16.msra.mxu1 %v933_v3 }
 0x13a   :  { %855 = vmatprep.subr.bf16.mxu1 %v1123_v0 }
 0x13d   :  { %856 = vmatpush3.bf16.msra.mxu1 %v934_v4 }
 0x13e   :  { %857 = vmatprep.subr.bf16.mxu1 %v1123_v0 }
 0x141   :  { %858 = vmatpush3.bf16.msra.mxu1 %v935_v5 }
 0x142   :  { %859 = vmatprep.subr.bf16.mxu1 %v1123_v0 }
 0x145   :  { %860 = vmatpush3.bf16.msra.mxu1 %v936_v6 }
 0x146   :  { %861 = vmatprep.subr.bf16.mxu1 %v1123_v0 }
 0x149   :  { %862 = vmatpush3.bf16.msra.mxu1 %v937_v7 }
 0x1ec   :  { %v406_v57 = vpop.f32.mrf.mxu1 }
 0x1ed   :  { %v407_v58 = vadd.f32 %v753_v56, %v406_v57 }
 0x1ee   :  { %v845_v59 = vpop.f32.mrf.mxu1 }
 0x1ef   :  { %v412_v60 = vmax.f32 %v407_v58, 0.0 }
 0x1f0   :  { %v409_v61 = vpop.f32.mrf.mxu1 }
 0x1f1   :  { %v413_v62 = vpack.c.bf16 %v412_v60, %v412_v60 }
 0x1f2   :  { %v846_v63 = vpop.f32.mrf.mxu1 }
 0x1f3   :  { %555 = vmatmul.mubr.bf16.vlgmr.msra.gmra.mxu0 %v413_v62 }
 0x2b3   :  { %v556_v15 = vpop.f32.mrf.mxu0 }
 0x2b4   :  { %v557_v16 = vadd.f32 %v556_v15, %v435_v13 }
 0x2b5   :  { %v558_v17 = vpop.f32.mrf.mxu0 }
 0x2b6   :  { %689 = vst [vmem:[#allocation12] sm:$0xff] %v557_v16  ;;  %v559_v18 = vadd.f32 %v558_v17, %v439_v14 }
 0x2b7   :  { %v560_v19 = vpop.f32.mrf.mxu0 }
 0x2b8   :  { %v563_v20 = vmul.f32 1.442695, %v559_v18 }
 0x2b9   :  { %v561_v0 = vpop.f32.mrf.mxu0 }
 0x2ba   :  { %938 = vpow2.f32 %v563_v20 }
 0x2c7   :  { %v939_v22 = vpop.eup %938 }
 0x2c8   :  { %690 = vst [vmem:[#allocation13] sm:$0xff] %v939_v22  ;;  %v566_v23 = vmul.f32 %v939_v22, %v565_v21 }
 0x2ca   :  { %v567_v24 = vadd.f32 %v566_v23, %v557_v16 }
 0x2cc   :  { %v568_v25 = vpack.c.bf16 %v567_v24, %v567_v24 }
 0x2ce   :  { %864 = vmatmul.mubr.bf16.vlgmr.msra.gmra.mxu1 %v568_v25 }
 0x38e   :  { %v674_v27 = vpop.f32.mrf.mxu1 }
 0x38f   :  { %v675_v28 = vadd.f32 %v778_v26, %v674_v27 }
 0x390   :  { %v865_v29 = vpop.f32.mrf.mxu1 }
 0x391   :  { %680 = vmax.xlane.f32.xlu0 %v675_v28 }
 0x392   :  { %v677_v30 = vpop.f32.mrf.mxu1 }
 0x394   :  { %v866_v31 = vpop.f32.mrf.mxu1 }
 0x41a   :  { %v681_v32 = vpop.xlane.xlu0 %680 }
 0x41b   :  { %v682_v33 = vsub.f32 %v675_v28, %v681_v32 }
 0x41d   :  { %v683_v34 = vmul.f32 1.442695, %v682_v33 }
 0x41f   :  { %940 = vpow2.f32 %v683_v34 }
 0x42c   :  { %v941_v35 = vpop.eup %940 }
 0x42d   :  { %685 = vadd.xlane.f32.xlu0 %v941_v35 }
 0x42e   :  { %1055 = shalt.err (!%p1052_p1)
}
 0x42f   :  { %711 = dma.vmem_to_hbm [thread:$0]  %s709_s16, 128, %s1273_s11, [#allocation14]  }
 0x430   :  { %s1064_s20 = scalar_lea.vmem %s699_s18, 128  ;;  %p1069_p3 = scmp.lt.s32.totalorder %s699_s18, %s699_s18 }
 0x431   :  { %p1065_p2 = scmp.ne.s32.totalorder %s699_s18, %s1064_s20  ;;  %p1070_p4 = scmp.lt.s32.totalorder %s1064_s20, %s1064_s20 }
 0x433   :  { %p1071_p5 = por %p1070_p4, %p1069_p3 }
 0x435   :  { %p1072_p6 = pnand %p1071_p5, %p1065_p2 }
 0x437   :  { %1075 = shalt.err (!%p1072_p6)
}
 0x438   :  { %701 = dma.vmem_to_hbm [thread:$0]  %s699_s18, 128, %s1272_s10, [#allocation5]  }
 0x439   :  { %s1128_s23 = smov [#allocation15]  }
 0x43a   :  { %s718_s5 = sshll.u32 %s1128_s23, 4  ;;  %s719_s5 = int_to_ptr.vmem [resolvable:$true] %s718_s5 }
 0x43b   :  { %s1084_s11 = scalar_lea.vmem %s719_s5, 128  ;;  %p1089_p8 = scmp.lt.s32.totalorder %s719_s5, %s719_s5 }
 0x43c   :  { %p1085_p7 = scmp.ne.s32.totalorder %s719_s5, %s1084_s11  ;;  %p1090_p9 = scmp.lt.s32.totalorder %s1084_s11, %s1084_s11 }
 0x43e   :  { %p1091_p10 = por %p1090_p9, %p1089_p8 }
 0x440   :  { %p1092_p11 = pnand %p1091_p10, %p1085_p7 }
 0x4b6   :  { %v686_v36 = vpop.xlane.xlu0 %685 }
 0x4b7   :  { %942 = vrcp.f32 %v686_v36 }
 0x4c4   :  { %v943_v37 = vpop.eup %942 }
 0x4c5   :  { %v688_v38 = vmul.f32 %v943_v37, %v941_v35 }
 0x4c7   :  { %691 = vst [vmem:[#allocation15] sm:$0xff] %v688_v38 }
 0x4c8   :  { %1095 = shalt.err (!%p1092_p11)
}
 0x4c9   :  { %721 = dma.vmem_to_hbm [thread:$0]  %s719_s5, 128, %s1274_s12, [#allocation14]  }
 0x4ca   :  { %1110 = dma.done.wait [#allocation5], 128  }
 0x4cb   :  { %1111 = vsyncadd [#allocation5], 4294967168 }
 0x4cc   :  { %1112 = dma.done.wait [#allocation14], 256  }
 0x4cd   :  { %1113 = vsyncadd [#allocation14], 4294967040 }
 0x4ce   :  { %731 = vsyncpa [#allocation4], 1 }
 0x4cf   :  { %732 = vsyncpa [#allocation7], 1 }
 0x4d0   :  { %733 = vsyncpa [#allocation10], 1 }
 0x4d1   :  { %734 = vsyncpa [#allocation5], 1 }
 0x4d2   :  { %735 = vsyncpa [#allocation14], 1 }

</bundles_post_ra>
